<compile_context>
chip_gen: v6e
topology: v6e:2x2x1
jax: 0.10.0
libtpu: 0.0.40
codegen_flags: <defaults>
</compile_context>

<pallas_src>
import numpy as np
import jax
import jax.numpy as jnp
from jax.experimental import pallas as pl
from jax.experimental.pallas import tpu as pltpu

NEG_SLOPE = 0.2
BN_EPS = 1e-5
CPAD = 128      # lane-dense padded channel width used for every layer
CIN_PAD = 8     # padded input-channel width for the first PointNet conv (3->8)


# ----------------------------- kernel helpers ------------------------------

def _lrelu(y):
    return jnp.where(y >= 0.0, y, NEG_SLOPE * y)


def _layer(x, w_ref, shift_ref):
    # folded conv1d(k=1) + BatchNorm(eval) + LeakyReLU:
    #   y = leaky_relu(x @ (w * bn_scale) + bn_shift, 0.2)
    y = jnp.dot(x.astype(jnp.bfloat16), w_ref[...],
                preferred_element_type=jnp.float32) + shift_ref[...]
    return _lrelu(y)


# ----------------------- kernel 1: PointNet + pooling -----------------------

def _pointnet_pool_kernel(x_ref, m_ref, w1, s1, w2, s2, w3, s3, o_ref, acc_ref):
    @pl.when(pl.program_id(0) == 0)
    def _():
        acc_ref[...] = jnp.zeros_like(acc_ref)

    h = _layer(x_ref[...], w1, s1)        # (TM, 128)  all in VMEM
    h = _layer(h, w2, s2)
    h = _layer(h, w3, s3)
    # pool_balls: normalized membership matmul (segment mean), f32 so the
    # 1/len weights stay exact.
    acc_ref[...] += jnp.dot(m_ref[...], h, preferred_element_type=jnp.float32)

    @pl.when(pl.program_id(0) == pl.num_programs(0) - 1)
    def _():
        o_ref[...] = acc_ref[...]


def pointnet_pool(xt_pad, m_pad, base, *, tm=128):
    rows, cin = xt_pad.shape
    nb = m_pad.shape[0]
    assert rows % tm == 0
    w1, s1 = base[0]["w"], base[0]["shift"]
    w2, s2 = base[1]["w"], base[1]["shift"]
    w3, s3 = base[2]["w"], base[2]["shift"]
    full = lambda a: pl.BlockSpec(a.shape, lambda i: (0, 0))
    # TODO(synk): for very large B*N, hoist pooling and mark the row grid
    # "parallel" (2 TensorCores on v7x) and re-derive the tile for 64 MiB VMEM.
    return pl.pallas_call(
        _pointnet_pool_kernel,
        grid=(rows // tm,),
        out_shape=jax.ShapeDtypeStruct((nb, CPAD), jnp.float32),
        in_specs=[
            pl.BlockSpec((tm, cin), lambda i: (i, 0)),   # point row tile
            pl.BlockSpec((nb, tm), lambda i: (0, i)),    # membership col tile
            full(w1), full(s1), full(w2), full(s2), full(w3), full(s3),
        ],
        out_specs=pl.BlockSpec((nb, CPAD), lambda i: (0, 0)),
        scratch_shapes=[pltpu.VMEM((nb, CPAD), jnp.float32)],
        compiler_params=pltpu.CompilerParams(
            dimension_semantics=("arbitrary",)),   # reduction over row tiles
    )(xt_pad, m_pad, w1, s1, w2, s2, w3, s3)


# --------------- kernel 2: pair net (QuadrantNet / DistanceNet) -------------

def _pairnet_kernel(g_ref, b_ref, w1, s1, w2, s2, w3, s3, fwa, fwb, fb, o_ref):
    # in-kernel one-hot pair gather; both pair members batched along rows.
    x = jnp.dot(g_ref[...].astype(jnp.bfloat16),
                b_ref[...].astype(jnp.bfloat16),
                preferred_element_type=jnp.float32)          # (2P, 128)
    h = _layer(x, w1, s1)
    h = _layer(h, w2, s2)
    h = _layer(h, w3, s3)                                    # (2P, 128)
    p = o_ref.shape[0]
    h1 = h[:p].astype(jnp.bfloat16)
    h2 = h[p:].astype(jnp.bfloat16)
    # fc(cat(h1, h2)) = h1 @ Wa + h2 @ Wb + b   (dropout = identity, eval)
    o_ref[...] = (jnp.dot(h1, fwa[...], preferred_element_type=jnp.float32)
                  + jnp.dot(h2, fwb[...], preferred_element_type=jnp.float32)
                  + fb[...])


def pairnet(g, b_vec, layers, fwa, fwb, fb):
    p = g.shape[0] // 2
    args = [g, b_vec,
            layers[0]["w"], layers[0]["shift"],
            layers[1]["w"], layers[1]["shift"],
            layers[2]["w"], layers[2]["shift"],
            fwa, fwb, fb]
    return pl.pallas_call(
        _pairnet_kernel,
        grid=(1,),
        out_shape=jax.ShapeDtypeStruct((p, CPAD), jnp.float32),
        in_specs=[pl.BlockSpec(a.shape, lambda i: (0, 0)) for a in args],
        out_specs=pl.BlockSpec((p, CPAD), lambda i: (0, 0)),
    )(*args)


# --------------------------- parameter utilities ---------------------------

def _pad2(a, rows, cols):
    return jnp.zeros((rows, cols), a.dtype).at[:a.shape[0], :a.shape[1]].set(a)


def make_conv_bn(key, cin, cout, cin_pad, cout_pad):
    """Conv1d(cin,cout,k=1,bias=False)+BatchNorm1d(cout) (eval), BN folded."""
    k1, k2, k3 = jax.random.split(key, 3)
    w = jax.random.normal(k1, (cin, cout), jnp.float32) * 0.1    # (in, out)
    gamma = 1.0 + 0.05 * jax.random.normal(k2, (cout,), jnp.float32)
    beta = 0.05 * jax.random.normal(k3, (cout,), jnp.float32)
    run_mean = jnp.zeros((cout,), jnp.float32)
    run_var = jnp.ones((cout,), jnp.float32)
    scale = gamma / jnp.sqrt(run_var + BN_EPS)
    shift = beta - run_mean * scale
    w_folded = w * scale[None, :]                 # fold BN scale into weight
    return {"w": _pad2(w_folded, cin_pad, cout_pad).astype(jnp.bfloat16),
            "shift": _pad2(shift.reshape(1, -1), 1, cout_pad)}   # f32


def make_pair_fc(key, emb, cout):
    """Linear(2*emb, cout) split into two zero-padded (128,128) halves."""
    k1, k2 = jax.random.split(key)
    w = jax.random.normal(k1, (2 * emb, cout), jnp.float32) * 0.1
    b = 0.05 * jax.random.normal(k2, (cout,), jnp.float32)
    fwa = _pad2(w[:emb], CPAD, CPAD).astype(jnp.bfloat16)
    fwb = _pad2(w[emb:], CPAD, CPAD).astype(jnp.bfloat16)
    fb = _pad2(b.reshape(1, -1), 1, CPAD)                        # f32
    return fwa, fwb, fb


def _pair_gather(ids, nb_pad):
    """One-hot (2P, nb_pad) matrix selecting [pairs[:,0]; pairs[:,1]] rows."""
    ids = np.asarray(ids)
    p = ids.shape[0]
    g = np.zeros((2 * p, nb_pad), np.float32)
    g[np.arange(p), ids[:, 0]] = 1.0
    g[np.arange(p) + p, ids[:, 1]] = 1.0
    return jnp.asarray(g)


# ------------------------------ CoverNet model -----------------------------

class CoverNetPallas:
    def __init__(self, key, emb_dims=64):
        ks = jax.random.split(key, 11)
        self.emb_dims = emb_dims
        # PointNet: 3 -> 32 -> 64 -> 128
        self.base = [make_conv_bn(ks[0], 3, 32, CIN_PAD, CPAD),
                     make_conv_bn(ks[1], 32, 64, CPAD, CPAD),
                     make_conv_bn(ks[2], 64, 128, CPAD, CPAD)]
        # QuadrantNet: 128 -> 64 -> 128 -> emb ; fc 2*emb -> 4
        self.quad = [make_conv_bn(ks[3], 128, 64, CPAD, CPAD),
                     make_conv_bn(ks[4], 64, 128, CPAD, CPAD),
                     make_conv_bn(ks[5], 128, emb_dims, CPAD, CPAD)]
        self.quad_out = 4
        self.quad_fc = make_pair_fc(ks[6], emb_dims, self.quad_out)
        # DistanceNet: 128 -> 64 -> 128 -> emb ; fc 2*emb -> 1
        self.dist = [make_conv_bn(ks[7], 128, 64, CPAD, CPAD),
                     make_conv_bn(ks[8], 64, 128, CPAD, CPAD),
                     make_conv_bn(ks[9], 128, emb_dims, CPAD, CPAD)]
        self.dist_out = 1
        self.dist_fc = make_pair_fc(ks[10], emb_dims, self.dist_out)

    def forward(self, x, trees, balls, diff_level_ids, same_level_ids):
        # x: (B, 3, N)  -- PyTorch NCW
        B, C, N = x.shape
        assert C == 3
        rows = B * N
        tm = 128
        rows_pad = ((rows + tm - 1) // tm) * tm

        # points-by-channels layout (B*N, 3), zero-padded to (rows_pad, 8) bf16
        xt = jnp.transpose(x, (0, 2, 1)).reshape(rows, C)
        xt_pad = jnp.zeros((rows_pad, CIN_PAD), jnp.bfloat16)
        xt_pad = xt_pad.at[:rows, :C].set(xt.astype(jnp.bfloat16))

        # pool_balls membership (normalized segment-mean weights).
        # TODO(synk): trees/balls are Python dicts, so membership indices are
        # built on host each call (like the PyTorch loop); at scale precompute
        # once or use scalar-prefetched member indices inside the kernel.
        total_balls = sum(len(b) for b in balls)
        nb_pad = max(8, ((total_balls + 7) // 8) * 8)
        m = np.zeros((nb_pad, rows_pad), np.float32)
        row = 0
        for i in range(B):
            tree, nodes = trees[i], balls[i]
            for j in range(len(tree.keys())):
                items = tree[nodes[j]][1:]
                if len(items) > 0:                       # guard empty balls
                    m[row, [i * N + it for it in items]] = 1.0 / len(items)
                row += 1
        m = jnp.asarray(m)

        # launch 1: fused PointNet stack + ball pooling -> (nb_pad, 128)
        b_vec = pointnet_pool(xt_pad, m, self.base, tm=tm)

        # one-hot pair-gather matrices (gather happens inside the kernels)
        g_diff = _pair_gather(diff_level_ids, nb_pad)
        g_same = _pair_gather(same_level_ids, nb_pad)

        # launches 2+3: fused gather + conv stack (both pair members batched
        # along rows) + concat/fc; outputs lane-padded to 128, sliced here.
        qd = pairnet(g_diff, b_vec, self.quad,
                     *self.quad_fc)[:, :self.quad_out]           # (Pd, 4)
        dis = pairnet(g_same, b_vec, self.dist,
                      *self.dist_fc)[:, :self.dist_out]          # (Ps, 1)
        return qd, dis


# ---------------------------------- main ------------------------------------

if __name__ == "__main__":
    key = jax.random.PRNGKey(0)
    k_param, k_x = jax.random.split(key)

    B, N, EMB = 2, 64, 64
    x = jax.random.normal(k_x, (B, 3, N), jnp.float32)

    # Synthetic trees/balls: 4 balls per cloud, each ball = 16 member points.
    trees, balls = [], []
    for i in range(B):
        nodes = [f"c{i}_n{j}" for j in range(4)]
        tree = {nodes[j]: [nodes[j]] + list(range(j * 16, (j + 1) * 16))
                for j in range(4)}
        trees.append(tree)
        balls.append(nodes)

    diff_level_ids = np.array([[0, 4], [1, 5], [2, 6], [3, 7]], dtype=np.int32)
    same_level_ids = np.array([[0, 1], [2, 3], [4, 5], [6, 7]], dtype=np.int32)

    model = CoverNetPallas(k_param, emb_dims=EMB)
    qd, dis = model.forward(x, trees, balls, diff_level_ids, same_level_ids)
    jax.block_until_ready((qd, dis))

    assert qd.shape == (4, 4) and dis.shape == (4, 1)
    assert not bool(jnp.isnan(qd).any()) and not bool(jnp.isnan(dis).any())
    print("KERNEL_OK")
</pallas_src>

<mosaic_0001>
module attributes {stable_mosaic.version = 11 : i64} {
  func.func @_pointnet_pool_kernel(%arg0: i32, %arg1: memref<128x8xbf16, #tpu.memory_space<vmem>>, %arg2: memref<8x128xf32, #tpu.memory_space<vmem>>, %arg3: memref<8x128xbf16, #tpu.memory_space<vmem>>, %arg4: memref<1x128xf32, #tpu.memory_space<vmem>>, %arg5: memref<128x128xbf16, #tpu.memory_space<vmem>>, %arg6: memref<1x128xf32, #tpu.memory_space<vmem>>, %arg7: memref<128x128xbf16, #tpu.memory_space<vmem>>, %arg8: memref<1x128xf32, #tpu.memory_space<vmem>>, %arg9: memref<8x128xf32, #tpu.memory_space<vmem>>, %arg10: memref<8x128xf32, #tpu.memory_space<vmem>>) attributes {dimension_semantics = [#tpu.dimension_semantics<arbitrary>], iteration_bounds = array<i64: 1>, scalar_prefetch = 0 : i64, scratch_operands = 1 : i64, tpu.core_type = #tpu.core_type<tc>, window_params = [{transform_indices = @transform_0, window_bounds = array<i64: 128, 8>}, {transform_indices = @transform_1, window_bounds = array<i64: 8, 128>}, {pipeline_mode = #tpu.pipeline_mode<synchronous>, transform_indices = @transform_2, window_bounds = array<i64: 8, 128>}, {pipeline_mode = #tpu.pipeline_mode<synchronous>, transform_indices = @transform_3, window_bounds = array<i64: 1, 128>}, {pipeline_mode = #tpu.pipeline_mode<synchronous>, transform_indices = @transform_4, window_bounds = array<i64: 128, 128>}, {pipeline_mode = #tpu.pipeline_mode<synchronous>, transform_indices = @transform_5, window_bounds = array<i64: 1, 128>}, {pipeline_mode = #tpu.pipeline_mode<synchronous>, transform_indices = @transform_6, window_bounds = array<i64: 128, 128>}, {pipeline_mode = #tpu.pipeline_mode<synchronous>, transform_indices = @transform_7, window_bounds = array<i64: 1, 128>}, {pipeline_mode = #tpu.pipeline_mode<synchronous>, transform_indices = @transform_8, window_bounds = array<i64: 8, 128>}]} {
    %c0_i32 = arith.constant 0 : i32
    %0 = arith.cmpi eq, %arg0, %c0_i32 : i32
    %1 = arith.extui %0 : i1 to i32
    %c0_i32_0 = arith.constant 0 : i32
    %2 = arith.cmpi ne, %1, %c0_i32_0 : i32
    scf.if %2 {
      %cst_31 = arith.constant 0.000000e+00 : f32
      %44 = vector.broadcast %cst_31 : f32 to vector<8x128xf32>
      %c0_32 = arith.constant 0 : index
      %c0_33 = arith.constant 0 : index
      %45 = vector.load %arg10[%c0_32, %c0_33] : memref<8x128xf32, #tpu.memory_space<vmem>>, vector<8x128xf32>
      tpu.vector_store %arg10[%c0_32, %c0_33], %44 {strides = array<i32>} : memref<8x128xf32, #tpu.memory_space<vmem>>, vector<8x128xf32>,
    } else {
    }
    %c0 = arith.constant 0 : index
    %c0_1 = arith.constant 0 : index
    %3 = vector.load %arg1[%c0, %c0_1] : memref<128x8xbf16, #tpu.memory_space<vmem>>, vector<128x8xbf16>
    %c0_2 = arith.constant 0 : index
    %c0_3 = arith.constant 0 : index
    %4 = vector.load %arg3[%c0_2, %c0_3] : memref<8x128xbf16, #tpu.memory_space<vmem>>, vector<8x128xbf16>
    %cst = arith.constant dense<0.000000e+00> : vector<128x128xf32>
    %5 = tpu.matmul %3, %4, %cst {dimension_numbers = #tpu.dot_dimension_numbers<[1], [0], [0], [1], [0, 0, 1, 1], [], []>} : vector<128x8xbf16>, vector<8x128xbf16>, vector<128x128xf32> -> vector<128x128xf32>
    %c0_4 = arith.constant 0 : index
    %c0_5 = arith.constant 0 : index
    %6 = vector.load %arg4[%c0_4, %c0_5] : memref<1x128xf32, #tpu.memory_space<vmem>>, vector<1x128xf32>
    %7 = vector.broadcast %6 : vector<1x128xf32> to vector<128x128xf32>
    %8 = arith.addf %5, %7 : vector<128x128xf32>
    %cst_6 = arith.constant 0.000000e+00 : f32
    %9 = vector.broadcast %cst_6 : f32 to vector<128x128xf32>
    %10 = arith.cmpf oge, %8, %9 : vector<128x128xf32>
    %cst_7 = arith.constant 2.000000e-01 : f32
    %11 = vector.broadcast %cst_7 : f32 to vector<128x128xf32>
    %12 = arith.mulf %11, %8 : vector<128x128xf32>
    %13 = arith.select %10, %8, %12 : vector<128x128xi1>, vector<128x128xf32>
    %14 = arith.truncf %13 : vector<128x128xf32> to vector<128x128xbf16>
    %c0_8 = arith.constant 0 : index
    %c0_9 = arith.constant 0 : index
    %15 = vector.load %arg5[%c0_8, %c0_9] : memref<128x128xbf16, #tpu.memory_space<vmem>>, vector<128x128xbf16>
    %cst_10 = arith.constant dense<0.000000e+00> : vector<128x128xf32>
    %16 = tpu.matmul %14, %15, %cst_10 {dimension_numbers = #tpu.dot_dimension_numbers<[1], [0], [0], [1], [0, 0, 1, 1], [], []>} : vector<128x128xbf16>, vector<128x128xbf16>, vector<128x128xf32> -> vector<128x128xf32>
    %c0_11 = arith.constant 0 : index
    %c0_12 = arith.constant 0 : index
    %17 = vector.load %arg6[%c0_11, %c0_12] : memref<1x128xf32, #tpu.memory_space<vmem>>, vector<1x128xf32>
    %18 = vector.broadcast %17 : vector<1x128xf32> to vector<128x128xf32>
    %19 = arith.addf %16, %18 : vector<128x128xf32>
    %cst_13 = arith.constant 0.000000e+00 : f32
    %20 = vector.broadcast %cst_13 : f32 to vector<128x128xf32>
    %21 = arith.cmpf oge, %19, %20 : vector<128x128xf32>
    %cst_14 = arith.constant 2.000000e-01 : f32
    %22 = vector.broadcast %cst_14 : f32 to vector<128x128xf32>
    %23 = arith.mulf %22, %19 : vector<128x128xf32>
    %24 = arith.select %21, %19, %23 : vector<128x128xi1>, vector<128x128xf32>
    %25 = arith.truncf %24 : vector<128x128xf32> to vector<128x128xbf16>
    %c0_15 = arith.constant 0 : index
    %c0_16 = arith.constant 0 : index
    %26 = vector.load %arg7[%c0_15, %c0_16] : memref<128x128xbf16, #tpu.memory_space<vmem>>, vector<128x128xbf16>
    %cst_17 = arith.constant dense<0.000000e+00> : vector<128x128xf32>
    %27 = tpu.matmul %25, %26, %cst_17 {dimension_numbers = #tpu.dot_dimension_numbers<[1], [0], [0], [1], [0, 0, 1, 1], [], []>} : vector<128x128xbf16>, vector<128x128xbf16>, vector<128x128xf32> -> vector<128x128xf32>
    %c0_18 = arith.constant 0 : index
    %c0_19 = arith.constant 0 : index
    %28 = vector.load %arg8[%c0_18, %c0_19] : memref<1x128xf32, #tpu.memory_space<vmem>>, vector<1x128xf32>
    %29 = vector.broadcast %28 : vector<1x128xf32> to vector<128x128xf32>
    %30 = arith.addf %27, %29 : vector<128x128xf32>
    %cst_20 = arith.constant 0.000000e+00 : f32
    %31 = vector.broadcast %cst_20 : f32 to vector<128x128xf32>
    %32 = arith.cmpf oge, %30, %31 : vector<128x128xf32>
    %cst_21 = arith.constant 2.000000e-01 : f32
    %33 = vector.broadcast %cst_21 : f32 to vector<128x128xf32>
    %34 = arith.mulf %33, %30 : vector<128x128xf32>
    %35 = arith.select %32, %30, %34 : vector<128x128xi1>, vector<128x128xf32>
    %c0_22 = arith.constant 0 : index
    %c0_23 = arith.constant 0 : index
    %36 = vector.load %arg10[%c0_22, %c0_23] : memref<8x128xf32, #tpu.memory_space<vmem>>, vector<8x128xf32>
    %c0_24 = arith.constant 0 : index
    %c0_25 = arith.constant 0 : index
    %37 = vector.load %arg2[%c0_24, %c0_25] : memref<8x128xf32, #tpu.memory_space<vmem>>, vector<8x128xf32>
    %cst_26 = arith.constant dense<0.000000e+00> : vector<8x128xf32>
    %38 = tpu.matmul %37, %35, %cst_26 {dimension_numbers = #tpu.dot_dimension_numbers<[1], [0], [0], [1], [0, 0, 1, 1], [], []>} : vector<8x128xf32>, vector<128x128xf32>, vector<8x128xf32> -> vector<8x128xf32>
    %39 = arith.addf %36, %38 : vector<8x128xf32>
    %c0_27 = arith.constant 0 : index
    %c0_28 = arith.constant 0 : index
    %40 = vector.load %arg10[%c0_27, %c0_28] : memref<8x128xf32, #tpu.memory_space<vmem>>, vector<8x128xf32>
    tpu.vector_store %arg10[%c0_27, %c0_28], %39 {strides = array<i32>} : memref<8x128xf32, #tpu.memory_space<vmem>>, vector<8x128xf32>,
    %c0_i32_29 = arith.constant 0 : i32
    %41 = arith.cmpi eq, %arg0, %c0_i32_29 : i32
    %42 = arith.extui %41 : i1 to i32
    %c0_i32_30 = arith.constant 0 : i32
    %43 = arith.cmpi ne, %42, %c0_i32_30 : i32
    scf.if %43 {
      %c0_31 = arith.constant 0 : index
      %c0_32 = arith.constant 0 : index
      %44 = vector.load %arg10[%c0_31, %c0_32] : memref<8x128xf32, #tpu.memory_space<vmem>>, vector<8x128xf32>
      %c0_33 = arith.constant 0 : index
      %c0_34 = arith.constant 0 : index
      %45 = vector.load %arg9[%c0_33, %c0_34] : memref<8x128xf32, #tpu.memory_space<vmem>>, vector<8x128xf32>
      tpu.vector_store %arg9[%c0_33, %c0_34], %44 {strides = array<i32>} : memref<8x128xf32, #tpu.memory_space<vmem>>, vector<8x128xf32>,
    } else {
    }
    return
  }
  func.func @transform_0(%arg0: i32) -> (i32, i32) {
    %c0_i32 = arith.constant 0 : i32
    %c0_i32_0 = arith.constant 0 : i32
    return %arg0, %c0_i32 : i32, i32
  }
  func.func @transform_1(%arg0: i32) -> (i32, i32) {
    %c0_i32 = arith.constant 0 : i32
    %c0_i32_0 = arith.constant 0 : i32
    return %c0_i32, %arg0 : i32, i32
  }
  func.func @transform_2(%arg0: i32) -> (i32, i32) {
    %c0_i32 = arith.constant 0 : i32
    %c0_i32_0 = arith.constant 0 : i32
    %c0_i32_1 = arith.constant 0 : i32
    return %c0_i32, %c0_i32_0 : i32, i32
  }
  func.func @transform_3(%arg0: i32) -> (i32, i32) {
    %c0_i32 = arith.constant 0 : i32
    %c0_i32_0 = arith.constant 0 : i32
    %c0_i32_1 = arith.constant 0 : i32
    return %c0_i32, %c0_i32_0 : i32, i32
  }
  func.func @transform_4(%arg0: i32) -> (i32, i32) {
    %c0_i32 = arith.constant 0 : i32
    %c0_i32_0 = arith.constant 0 : i32
    %c0_i32_1 = arith.constant 0 : i32
    return %c0_i32, %c0_i32_0 : i32, i32
  }
  func.func @transform_5(%arg0: i32) -> (i32, i32) {
    %c0_i32 = arith.constant 0 : i32
    %c0_i32_0 = arith.constant 0 : i32
    %c0_i32_1 = arith.constant 0 : i32
    return %c0_i32, %c0_i32_0 : i32, i32
  }
  func.func @transform_6(%arg0: i32) -> (i32, i32) {
    %c0_i32 = arith.constant 0 : i32
    %c0_i32_0 = arith.constant 0 : i32
    %c0_i32_1 = arith.constant 0 : i32
    return %c0_i32, %c0_i32_0 : i32, i32
  }
  func.func @transform_7(%arg0: i32) -> (i32, i32) {
    %c0_i32 = arith.constant 0 : i32
    %c0_i32_0 = arith.constant 0 : i32
    %c0_i32_1 = arith.constant 0 : i32
    return %c0_i32, %c0_i32_0 : i32, i32
  }
  func.func @transform_8(%arg0: i32) -> (i32, i32) {
    %c0_i32 = arith.constant 0 : i32
    %c0_i32_0 = arith.constant 0 : i32
    %c0_i32_1 = arith.constant 0 : i32
    return %c0_i32, %c0_i32_0 : i32, i32
  }
}

</mosaic_0001>

<bundles_post_ra>
// kernel: tpu_custom_call.1
= control target key start
LH: loop header
LB: loop body
LE: loop exit
PB: predicated region body
PF: predicated region fallthrough
CT: control target
= control target key end

     0   :  { %13 = vsyncpa [#allocation4], 0  ;;  %s1363_s0 = inlined_call_operand.vmem [shape: bf16[128,8], index: 0, kind: input, shape index: {}]   ;;  %s1364_s1 = inlined_call_operand.vmem [shape: f32[8,128], index: 1, kind: input, shape index: {}]   ;;  %s1365_s2 = inlined_call_operand.hbm [shape: bf16[8,128], index: 2, kind: input, shape index: {}]   ;;  %s1366_s3 = inlined_call_operand.vmem [shape: f32[1,128], index: 3, kind: input, shape index: {}]   ;;  %s1367_s4 = inlined_call_operand.vmem [shape: bf16[128,128], index: 4, kind: input, shape index: {}]   ;;  %s1368_s5 = inlined_call_operand.vmem [shape: f32[1,128], index: 5, kind: input, shape index: {}]   ;;  %s1369_s6 = inlined_call_operand.hbm [shape: bf16[128,128], index: 6, kind: input, shape index: {}]   ;;  %s1370_s7 = inlined_call_operand.vmem [shape: f32[1,128], index: 7, kind: input, shape index: {}]   ;;  %s1371_s8 = inlined_call_operand.hbm [shape: f32[8,128], index: 8, kind: output, shape index: {}]  }
   0x1   :  { %14 = vsyncpa [#allocation7], 0 }
   0x2   :  { %15 = vsyncpa [#allocation5], 0  ;;  %s1151_s27 = smov [#allocation3]   ;;  %s1152_s29 = smov [#allocation6]  }
   0x3   :  { %s26_s28 = sshll.u32 %s1151_s27, 4  ;;  %s41_s30 = sshll.u32 %s1152_s29, 4  ;;  %s27_s28 = int_to_ptr.vmem [resolvable:$true] %s26_s28  ;;  %s42_s30 = int_to_ptr.vmem [resolvable:$true] %s41_s30 }
   0x4   :  { %s1093_s9 = scalar_lea.vmem %s27_s28, 64  ;;  %p1098_p1 = scmp.lt.s32.totalorder %s27_s28, %s27_s28 }
   0x5   :  { %p1094_p0 = scmp.ne.s32.totalorder %s27_s28, %s1093_s9  ;;  %p1099_p2 = scmp.lt.s32.totalorder %s1093_s9, %s1093_s9 }
   0x7   :  { %p1100_p3 = por %p1099_p2, %p1098_p1 }
   0x9   :  { %p1101_p4 = pnand %p1100_p3, %p1094_p0 }
   0xb   :  { %1104 = shalt.err (!%p1101_p4)
}
   0xc   :  { %29 = dma.hbm_to_vmem [thread:$0]  %s1365_s2, 64, %s27_s28, [#allocation4]  }
   0xd   :  { %s1113_s12 = scalar_lea.vmem %s42_s30, 1024  ;;  %p1118_p6 = scmp.lt.s32.totalorder %s42_s30, %s42_s30 }
   0xe   :  { %p1114_p5 = scmp.ne.s32.totalorder %s42_s30, %s1113_s12  ;;  %p1119_p7 = scmp.lt.s32.totalorder %s1113_s12, %s1113_s12 }
  0x10   :  { %p1120_p8 = por %p1119_p7, %p1118_p6 }
  0x12   :  { %p1121_p9 = pnand %p1120_p8, %p1114_p5 }
  0x14   :  { %1124 = shalt.err (!%p1121_p9)
}
  0x15   :  { %s1153_s13 = smov 64   ;;  %s1154_s14 = smov 4  }
  0x16   :  { %47 = dma.hbm_to_vmem [thread:$0]  %s1369_s6, 1024, %s42_s30, [#allocation7], %s1153_s13, %s1153_s13, %s1154_s14  }
  0x17   :  { %1145 = dma.done.wait [#allocation4], 64  }
  0x18   :  { %1146 = vsyncadd [#allocation4], 4294967232 }
  0x19   :  { %1147 = dma.done.wait [#allocation7], 1024  }
  0x1a   :  { %1148 = vsyncadd [#allocation7], 4294966272  ;;  %vm151_vm0 = vcmask 1043456   ;;  %vm126_vm1 = vcmask 64512   ;;  %v78_v0 = vld [vmem:[#allocation3] sm:$0xf] }
  0x1b   :  { %1053 = vmatprep.subr.msk.bf16.mxu0 %vm151_vm0, %v78_v0  ;;  %v153_v1 = vsel %vm151_vm0, %v78_v0, 0  ;;  %v1061_v2 = vld [vmem:[%s1363_s0] sm:$0xff]   ;;  %v1062_v3 = vld [vmem:[%s1363_s0 + $0x8] sm:$0xff]   ;;  %v1063_v4 = vld [vmem:[%s1363_s0 + $0x10] sm:$0xff]   ;;  %s1157_s26 = smov [#allocation8]  }
  0x1c   :  { %937 = vmatpush3.bf16.msra.mxu0 %v153_v1  ;;  %938 = vmatprep.mubr.msk.bf16.mxu0 %vm126_vm1, %v1061_v2  ;;  %v1064_v5 = vld [vmem:[%s1363_s0 + $0x18] sm:$0xff]   ;;  %v1065_v6 = vld [vmem:[%s1363_s0 + $0x20] sm:$0xff]   ;;  %v1070_v8 = vld [vmem:[%s1367_s4 + $0x30] sm:$0xff]   ;;  %s833_s27 = sshll.u32 %s1157_s26, 4  ;;  %s834_s27 = int_to_ptr.vmem [resolvable:$true] %s833_s27 }
  0x1d   :  { %v1069_v7 = vld [vmem:[%s1367_s4 + $0x38] sm:$0xff]   ;;  %v1071_v9 = vld [vmem:[%s1367_s4 + $0x28] sm:$0xff]   ;;  %v1072_v11 = vld [vmem:[%s1367_s4 + $0x20] sm:$0xff]   ;;  %s1125_s28 = scalar_lea.vmem %s834_s27, 128  ;;  %p1130_p11 = scmp.lt.s32.totalorder %s834_s27, %s834_s27 }
  0x1e   :  { %954 = vmatprep.subr.bf16.mxu1 %v1069_v7  ;;  %v1066_v10 = vld [vmem:[%s1363_s0 + $0x28] sm:$0xff]   ;;  %v1067_v12 = vld [vmem:[%s1363_s0 + $0x30] sm:$0xff]   ;;  %v1073_v13 = vld [vmem:[%s1367_s4 + $0x18] sm:$0xff]   ;;  %p1126_p10 = scmp.ne.s32.totalorder %s834_s27, %s1125_s28  ;;  %p1131_p12 = scmp.lt.s32.totalorder %s1125_s28, %s1125_s28 }
  0x1f   :  { %939 = vmatmul.mubr.msk.bf16.vlgmr.msra.gmra.mxu0 %vm126_vm1, %v1062_v3  ;;  %955 = vmatpush3.bf16.msra.mxu1 %v1069_v7  ;;  %v1068_v14 = vld [vmem:[%s1363_s0 + $0x38] sm:$0xff]   ;;  %v1074_v15 = vld [vmem:[%s1367_s4 + $0x10] sm:$0xff]   ;;  %v1075_v16 = vld [vmem:[%s1367_s4 + $0x8] sm:$0xff]  }
  0x20   :  { %942 = vmatprep.mubr.msk.bf16.mxu0 %vm126_vm1, %v1063_v4  ;;  %956 = vmatprep.subr.bf16.mxu1 %v1070_v8  ;;  %v1076_v17 = vld [vmem:[%s1367_s4] sm:$0xff]   ;;  %v1078_v19 = vld [vmem:[#allocation6 + $0x30] sm:$0xff]   ;;  %v1079_v20 = vld [vmem:[#allocation6 + $0x28] sm:$0xff]   ;;  %p1132_p13 = por %p1131_p12, %p1130_p11 }
  0x21   :  { %v1077_v18 = vld [vmem:[#allocation6 + $0x38] sm:$0xff]   ;;  %v1080_v21 = vld [vmem:[#allocation6 + $0x20] sm:$0xff]  }
  0x22   :  { %986 = vmatprep.subr.bf16.mxu0 %v1077_v18  ;;  %v1081_v22 = vld [vmem:[#allocation6 + $0x18] sm:$0xff]   ;;  %p1133_p0 = pnand %p1132_p13, %p1126_p10 }
  0x23   :  { %957 = vmatpush3.bf16.msra.mxu1 %v1070_v8  ;;  %987 = vmatpush3.bf16.msra.mxu0 %v1077_v18  ;;  %v1268_v24 = vld [vmem:[%s1366_s3] ss:$0 sm:$0xff] }
  0x24   :  { %958 = vmatprep.subr.bf16.mxu1 %v1071_v9  ;;  %988 = vmatprep.subr.bf16.mxu0 %v1078_v19 }
  0x27   :  { %943 = vmatmul.mubr.msk.bf16.gmra.mxu0 %vm126_vm1, %v1064_v5  ;;  %959 = vmatpush3.bf16.msra.mxu1 %v1071_v9 }
  0x28   :  { %946 = vmatprep.mubr.msk.bf16.mxu0 %vm126_vm1, %v1065_v6  ;;  %960 = vmatprep.subr.bf16.mxu1 %v1072_v11 }
  0x29   :  { %989 = vmatpush3.bf16.msra.mxu0 %v1078_v19 }
  0x2a   :  { %990 = vmatprep.subr.bf16.mxu0 %v1079_v20 }
  0x2b   :  { %961 = vmatpush3.bf16.msra.mxu1 %v1072_v11 }
  0x2c   :  { %962 = vmatprep.subr.bf16.mxu1 %v1073_v13 }
  0x2d   :  { %991 = vmatpush3.bf16.msra.mxu0 %v1079_v20 }
  0x2e   :  { %992 = vmatprep.subr.bf16.mxu0 %v1080_v21 }
  0x2f   :  { %947 = vmatmul.mubr.msk.bf16.gmra.mxu0 %vm126_vm1, %v1066_v10  ;;  %963 = vmatpush3.bf16.msra.mxu1 %v1073_v13 }
  0x30   :  { %950 = vmatprep.mubr.msk.bf16.mxu0 %vm126_vm1, %v1067_v12  ;;  %964 = vmatprep.subr.bf16.mxu1 %v1074_v15 }
  0x31   :  { %993 = vmatpush3.bf16.msra.mxu0 %v1080_v21 }
  0x32   :  { %994 = vmatprep.subr.bf16.mxu0 %v1081_v22 }
  0x33   :  { %965 = vmatpush3.bf16.msra.mxu1 %v1074_v15 }
  0x34   :  { %966 = vmatprep.subr.bf16.mxu1 %v1075_v16 }
  0x35   :  { %995 = vmatpush3.bf16.msra.mxu0 %v1081_v22 }
  0x37   :  { %951 = vmatmul.mubr.msk.bf16.gmra.mxu0 %vm126_vm1, %v1068_v14  ;;  %967 = vmatpush3.bf16.msra.mxu1 %v1075_v16 }
  0x38   :  { %968 = vmatprep.subr.bf16.mxu1 %v1076_v17 }
  0x3b   :  { %969 = vmatpush3.bf16.msra.mxu1 %v1076_v17 }
  0xdf   :  { %v940_v23 = vpop.f32.mrf.mxu0 }
  0xe0   :  { %v198_v27 = vadd.f32 %v940_v23, %v1268_v24 }
  0xe1   :  { %v189_v25 = vpop.f32.mrf.mxu0 }
  0xe2   :  { %v190_v26 = vadd.f32 %v1268_v24, %v189_v25  ;;  %v270_v34 = vmul.f32 0.2, %v198_v27  ;;  %vm254_vm4 = vcmp.ge.f32.partialorder %v198_v27, 0.0 }
  0xe3   :  { %v941_v28 = vpop.f32.mrf.mxu0 }
  0xe4   :  { %v201_v29 = vadd.f32 %v941_v28, %v1268_v24  ;;  %v268_v31 = vmul.f32 0.2, %v190_v26  ;;  %vm252_vm3 = vcmp.ge.f32.partialorder %v190_v26, 0.0  ;;  %v286_v45 = vsel %vm254_vm4, %v198_v27, %v270_v34  ;;  %v1083_v34 = vld [vmem:[#allocation6 + $0x8] sm:$0xff]  }
  0xe5   :  { %v192_v30 = vpop.f32.mrf.mxu0 }
  0xe6   :  { %vm255_vm2 = vcmp.ge.f32.partialorder %v201_v29, 0.0  ;;  %v271_v32 = vmul.f32 0.2, %v201_v29  ;;  %v193_v33 = vadd.f32 %v1268_v24, %v192_v30  ;;  %v284_v40 = vsel %vm252_vm3, %v190_v26, %v268_v31 }
  0xe7   :  { %v944_v35 = vpop.f32.mrf.mxu0 }
  0xe8   :  { %v269_v36 = vmul.f32 0.2, %v193_v33  ;;  %vm253_vm5 = vcmp.ge.f32.partialorder %v193_v33, 0.0  ;;  %v287_v38 = vsel %vm255_vm2, %v201_v29, %v271_v32  ;;  %v214_v42 = vadd.f32 %v944_v35, %v1268_v24 }
  0xe9   :  { %v205_v37 = vpop.f32.mrf.mxu0  ;;  %v301_v47 = vpack.c.bf16 %v287_v38, %v286_v45 }
  0xea   :  { %v206_v39 = vadd.f32 %v1268_v24, %v205_v37  ;;  %v285_v41 = vsel %vm253_vm5, %v193_v33, %v269_v36  ;;  %v274_v52 = vmul.f32 0.2, %v214_v42  ;;  %vm258_vm8 = vcmp.ge.f32.partialorder %v214_v42, 0.0  ;;  %v1082_v33 = vld [vmem:[#allocation6 + $0x10] sm:$0xff]   ;;  %v1289_v36 = vld [vmem:[%s1368_s5] ss:$0 sm:$0xff] }
  0xeb   :  { %v945_v43 = vpop.f32.mrf.mxu0  ;;  %v300_v44 = vpack.c.bf16 %v285_v41, %v284_v40  ;;  %996 = vmatprep.subr.bf16.mxu0 %v1082_v33 }
  0xec   :  { %v217_v46 = vadd.f32 %v945_v43, %v1268_v24  ;;  %v272_v49 = vmul.f32 0.2, %v206_v39  ;;  %vm256_vm7 = vcmp.ge.f32.partialorder %v206_v39, 0.0  ;;  %v290_v63 = vsel %vm258_vm8, %v214_v42, %v274_v52  ;;  %997 = vmatpush3.bf16.msra.mxu0 %v1082_v33 }
  0xed   :  { %v208_v48 = vpop.f32.mrf.mxu0  ;;  %970 = vmatprep.mubr.bf16.mxu1 %v300_v44  ;;  %998 = vmatprep.subr.bf16.mxu0 %v1083_v34 }
  0xee   :  { %vm259_vm6 = vcmp.ge.f32.partialorder %v217_v46, 0.0  ;;  %v275_v50 = vmul.f32 0.2, %v217_v46  ;;  %v209_v51 = vadd.f32 %v1268_v24, %v208_v48  ;;  %971 = vmatmul.mubr.bf16.vlgmr.msra.gmra.mxu1 %v301_v47  ;;  %v288_v58 = vsel %vm256_vm7, %v206_v39, %v272_v49 }
  0xef   :  { %v948_v53 = vpop.f32.mrf.mxu0 }
  0xf0   :  { %vm257_vm9 = vcmp.ge.f32.partialorder %v209_v51, 0.0  ;;  %v273_v54 = vmul.f32 0.2, %v209_v51  ;;  %v291_v56 = vsel %vm259_vm6, %v217_v46, %v275_v50  ;;  %v230_v60 = vadd.f32 %v948_v53, %v1268_v24  ;;  %999 = vmatpush3.bf16.msra.mxu0 %v1083_v34 }
  0xf1   :  { %v221_v55 = vpop.f32.mrf.mxu0  ;;  %v303_v1 = vpack.c.bf16 %v291_v56, %v290_v63 }
  0xf2   :  { %v222_v57 = vadd.f32 %v1268_v24, %v221_v55  ;;  %v289_v59 = vsel %vm257_vm9, %v209_v51, %v273_v54  ;;  %v278_v6 = vmul.f32 0.2, %v230_v60  ;;  %vm262_vm12 = vcmp.ge.f32.partialorder %v230_v60, 0.0 }
  0xf3   :  { %v949_v61 = vpop.f32.mrf.mxu0  ;;  %v302_v62 = vpack.c.bf16 %v289_v59, %v288_v58 }
  0xf4   :  { %v233_v0 = vadd.f32 %v949_v61, %v1268_v24  ;;  %v276_v3 = vmul.f32 0.2, %v222_v57  ;;  %vm260_vm11 = vcmp.ge.f32.partialorder %v222_v57, 0.0  ;;  %v294_v17 = vsel %vm262_vm12, %v230_v60, %v278_v6 }
  0xf5   :  { %v224_v2 = vpop.f32.mrf.mxu0  ;;  %974 = vmatprep.mubr.bf16.mxu1 %v302_v62 }
  0xf6   :  { %vm263_vm10 = vcmp.ge.f32.partialorder %v233_v0, 0.0  ;;  %v279_v4 = vmul.f32 0.2, %v233_v0  ;;  %v225_v5 = vadd.f32 %v1268_v24, %v224_v2  ;;  %975 = vmatmul.mubr.bf16.gmra.mxu1 %v303_v1  ;;  %v292_v12 = vsel %vm260_vm11, %v222_v57, %v276_v3 }
  0xf7   :  { %v952_v7 = vpop.f32.mrf.mxu0 }
  0xf8   :  { %vm261_vm13 = vcmp.ge.f32.partialorder %v225_v5, 0.0  ;;  %v277_v8 = vmul.f32 0.2, %v225_v5  ;;  %v295_v10 = vsel %vm263_vm10, %v233_v0, %v279_v4  ;;  %v246_v14 = vadd.f32 %v952_v7, %v1268_v24 }
  0xf9   :  { %v237_v9 = vpop.f32.mrf.mxu0  ;;  %v305_v19 = vpack.c.bf16 %v295_v10, %v294_v17 }
  0xfa   :  { %v238_v11 = vadd.f32 %v1268_v24, %v237_v9  ;;  %v293_v13 = vsel %vm261_vm13, %v225_v5, %v277_v8  ;;  %v282_v25 = vmul.f32 0.2, %v246_v14  ;;  %vm266_vm0 = vcmp.ge.f32.partialorder %v246_v14, 0.0 }
  0xfb   :  { %v953_v15 = vpop.f32.mrf.mxu0  ;;  %v304_v16 = vpack.c.bf16 %v293_v13, %v292_v12 }
  0xfc   :  { %v249_v18 = vadd.f32 %v953_v15, %v1268_v24  ;;  %v280_v21 = vmul.f32 0.2, %v238_v11  ;;  %vm264_vm15 = vcmp.ge.f32.partialorder %v238_v11, 0.0  ;;  %v298_v31 = vsel %vm266_vm0, %v246_v14, %v282_v25 }
  0xfd   :  { %v240_v20 = vpop.f32.mrf.mxu0  ;;  %978 = vmatprep.mubr.bf16.mxu1 %v304_v16 }
  0xfe   :  { %vm267_vm14 = vcmp.ge.f32.partialorder %v249_v18, 0.0  ;;  %v283_v22 = vmul.f32 0.2, %v249_v18  ;;  %v241_v23 = vadd.f32 %v1268_v24, %v240_v20  ;;  %979 = vmatmul.mubr.bf16.gmra.mxu1 %v305_v19  ;;  %v296_v28 = vsel %vm264_vm15, %v238_v11, %v280_v21  ;;  %v1084_v24 = vld [vmem:[#allocation6] sm:$0xff]  }
  0xff   :  { %1000 = vmatprep.subr.bf16.mxu0 %v1084_v24 }
 0x100   :  { %vm265_vm1 = vcmp.ge.f32.partialorder %v241_v23, 0.0  ;;  %v281_v26 = vmul.f32 0.2, %v241_v23  ;;  %v299_v27 = vsel %vm267_vm14, %v249_v18, %v283_v22  ;;  %1001 = vmatpush3.bf16.msra.mxu0 %v1084_v24 }
 0x101   :  { %v307_v32 = vpack.c.bf16 %v299_v27, %v298_v31 }
 0x102   :  { %v297_v29 = vsel %vm265_vm1, %v241_v23, %v281_v26 }
 0x103   :  { %v306_v30 = vpack.c.bf16 %v297_v29, %v296_v28 }
 0x105   :  { %982 = vmatprep.mubr.bf16.mxu1 %v306_v30 }
 0x106   :  { %983 = vmatmul.mubr.bf16.gmra.mxu1 %v307_v32 }
 0x1ae   :  { %v972_v35 = vpop.f32.mrf.mxu1 }
 0x1af   :  { %v422_v39 = vadd.f32 %v972_v35, %v1289_v36 }
 0x1b0   :  { %v413_v37 = vpop.f32.mrf.mxu1 }
 0x1b1   :  { %v414_v38 = vadd.f32 %v1289_v36, %v413_v37  ;;  %v494_v46 = vmul.f32 0.2, %v422_v39  ;;  %vm478_vm4 = vcmp.ge.f32.partialorder %v422_v39, 0.0 }
 0x1b2   :  { %v973_v40 = vpop.f32.mrf.mxu1 }
 0x1b3   :  { %v425_v41 = vadd.f32 %v973_v40, %v1289_v36  ;;  %v492_v43 = vmul.f32 0.2, %v414_v38  ;;  %vm476_vm3 = vcmp.ge.f32.partialorder %v414_v38, 0.0  ;;  %v510_v54 = vsel %vm478_vm4, %v422_v39, %v494_v46 }
 0x1b4   :  { %v416_v42 = vpop.f32.mrf.mxu1 }
 0x1b5   :  { %vm479_vm2 = vcmp.ge.f32.partialorder %v425_v41, 0.0  ;;  %v495_v44 = vmul.f32 0.2, %v425_v41  ;;  %v417_v45 = vadd.f32 %v1289_v36, %v416_v42  ;;  %v508_v52 = vsel %vm476_vm3, %v414_v38, %v492_v43 }
 0x1b6   :  { %v976_v47 = vpop.f32.mrf.mxu1 }
 0x1b7   :  { %vm477_vm5 = vcmp.ge.f32.partialorder %v417_v45, 0.0  ;;  %v493_v48 = vmul.f32 0.2, %v417_v45  ;;  %v511_v49 = vsel %vm479_vm2, %v425_v41, %v495_v44  ;;  %v438_v55 = vadd.f32 %v976_v47, %v1289_v36 }
 0x1b8   :  { %v429_v50 = vpop.f32.mrf.mxu1  ;;  %v525_v58 = vpack.c.bf16 %v511_v49, %v510_v54  ;;  %vm1156_vm2 = vmmov 0  }
 0x1b9   :  { %v430_v51 = vadd.f32 %v1289_v36, %v429_v50  ;;  %v509_v53 = vsel %vm477_vm5, %v417_v45, %v493_v48  ;;  %v498_v0 = vmul.f32 0.2, %v438_v55  ;;  %vm482_vm8 = vcmp.ge.f32.partialorder %v438_v55, 0.0 }
 0x1ba   :  { %v977_v56 = vpop.f32.mrf.mxu1  ;;  %v524_v57 = vpack.c.bf16 %v509_v53, %v508_v52  ;;  %v1155_v45 = vmov 0.0  }
 0x1bb   :  { %v441_v59 = vadd.f32 %v977_v56, %v1289_v36  ;;  %v496_v61 = vmul.f32 0.2, %v430_v51  ;;  %vm480_vm7 = vcmp.ge.f32.partialorder %v430_v51, 0.0  ;;  %v514_v11 = vsel %vm482_vm8, %v438_v55, %v498_v0  ;;  %1018 = vmatprep.subr.mxu1 %v1155_v45  ;;  %1050 = vmatprep.mubr.msk.f32.mxu1 %vm1156_vm2, %v1155_v45 }
 0x1bc   :  { %v432_v60 = vpop.f32.mrf.mxu1  ;;  %1002 = vmatprep.mubr.bf16.mxu0 %v524_v57 }
 0x1bd   :  { %vm483_vm6 = vcmp.ge.f32.partialorder %v441_v59, 0.0  ;;  %v499_v62 = vmul.f32 0.2, %v441_v59  ;;  %v433_v63 = vadd.f32 %v1289_v36, %v432_v60  ;;  %1003 = vmatmul.mubr.bf16.vlgmr.msra.gmra.mxu0 %v525_v58  ;;  %v512_v6 = vsel %vm480_vm7, %v430_v51, %v496_v61  ;;  %v1320_v58 = vld [vmem:[%s1370_s7] ss:$0 sm:$0xff] }
 0x1be   :  { %v980_v1 = vpop.f32.mrf.mxu1 }
 0x1bf   :  { %vm481_vm9 = vcmp.ge.f32.partialorder %v433_v63, 0.0  ;;  %v497_v2 = vmul.f32 0.2, %v433_v63  ;;  %v515_v4 = vsel %vm483_vm6, %v441_v59, %v499_v62  ;;  %v454_v8 = vadd.f32 %v980_v1, %v1289_v36 }
 0x1c0   :  { %v445_v3 = vpop.f32.mrf.mxu1  ;;  %v527_v13 = vpack.c.bf16 %v515_v4, %v514_v11 }
 0x1c1   :  { %v446_v5 = vadd.f32 %v1289_v36, %v445_v3  ;;  %v513_v7 = vsel %vm481_vm9, %v433_v63, %v497_v2  ;;  %v502_v18 = vmul.f32 0.2, %v454_v8  ;;  %vm486_vm12 = vcmp.ge.f32.partialorder %v454_v8, 0.0 }
 0x1c2   :  { %v981_v9 = vpop.f32.mrf.mxu1  ;;  %v526_v10 = vpack.c.bf16 %v513_v7, %v512_v6 }
 0x1c3   :  { %v457_v12 = vadd.f32 %v981_v9, %v1289_v36  ;;  %v500_v15 = vmul.f32 0.2, %v446_v5  ;;  %vm484_vm11 = vcmp.ge.f32.partialorder %v446_v5, 0.0  ;;  %v518_v30 = vsel %vm486_vm12, %v454_v8, %v502_v18 }
 0x1c4   :  { %v448_v14 = vpop.f32.mrf.mxu1  ;;  %1006 = vmatprep.mubr.bf16.mxu0 %v526_v10 }
 0x1c5   :  { %vm487_vm10 = vcmp.ge.f32.partialorder %v457_v12, 0.0  ;;  %v503_v16 = vmul.f32 0.2, %v457_v12  ;;  %v449_v17 = vadd.f32 %v1289_v36, %v448_v14  ;;  %1007 = vmatmul.mubr.bf16.gmra.mxu0 %v527_v13  ;;  %v516_v25 = vsel %vm484_vm11, %v446_v5, %v500_v15 }
 0x1c6   :  { %v984_v19 = vpop.f32.mrf.mxu1 }
 0x1c7   :  { %vm485_vm13 = vcmp.ge.f32.partialorder %v449_v17, 0.0  ;;  %v501_v20 = vmul.f32 0.2, %v449_v17  ;;  %v519_v22 = vsel %vm487_vm10, %v457_v12, %v503_v16  ;;  %v470_v27 = vadd.f32 %v984_v19, %v1289_v36 }
 0x1c8   :  { %v461_v21 = vpop.f32.mrf.mxu1  ;;  %v529_v32 = vpack.c.bf16 %v519_v22, %v518_v30 }
 0x1c9   :  { %v462_v23 = vadd.f32 %v1289_v36, %v461_v21  ;;  %v517_v26 = vsel %vm485_vm13, %v449_v17, %v501_v20  ;;  %v506_v37 = vmul.f32 0.2, %v470_v27  ;;  %vm490_vm0 = vcmp.ge.f32.partialorder %v470_v27, 0.0 }
 0x1ca   :  { %v985_v28 = vpop.f32.mrf.mxu1  ;;  %v528_v29 = vpack.c.bf16 %v517_v26, %v516_v25 }
 0x1cb   :  { %v473_v31 = vadd.f32 %v985_v28, %v1289_v36  ;;  %v504_v34 = vmul.f32 0.2, %v462_v23  ;;  %vm488_vm15 = vcmp.ge.f32.partialorder %v462_v23, 0.0  ;;  %v522_v43 = vsel %vm490_vm0, %v470_v27, %v506_v37 }
 0x1cc   :  { %v464_v33 = vpop.f32.mrf.mxu1  ;;  %1010 = vmatprep.mubr.bf16.mxu0 %v528_v29 }
 0x1cd   :  { %vm491_vm14 = vcmp.ge.f32.partialorder %v473_v31, 0.0  ;;  %v507_v24 = vmul.f32 0.2, %v473_v31  ;;  %v465_v35 = vadd.f32 %v1289_v36, %v464_v33  ;;  %1011 = vmatmul.mubr.bf16.gmra.mxu0 %v529_v32  ;;  %v520_v40 = vsel %vm488_vm15, %v462_v23, %v504_v34 }
 0x1cf   :  { %vm489_vm1 = vcmp.ge.f32.partialorder %v465_v35, 0.0  ;;  %v505_v38 = vmul.f32 0.2, %v465_v35  ;;  %v523_v39 = vsel %vm491_vm14, %v473_v31, %v507_v24 }
 0x1d0   :  { %v531_v44 = vpack.c.bf16 %v523_v39, %v522_v43 }
 0x1d1   :  { %v521_v41 = vsel %vm489_vm1, %v465_v35, %v505_v38 }
 0x1d2   :  { %v530_v42 = vpack.c.bf16 %v521_v41, %v520_v40 }
 0x1d4   :  { %1014 = vmatprep.mubr.bf16.mxu0 %v530_v42 }
 0x1d5   :  { %1015 = vmatmul.mubr.bf16.gmra.mxu0 %v531_v44 }
 0x27d   :  { %v1309_v36 = vpop.f32.mrf.mxu0 }
 0x27e   :  { %v646_v32 = vadd.f32 %v1309_v36, %v1320_v58 }
 0x27f   :  { %v1311_v46 = vpop.f32.mrf.mxu0 }
 0x280   :  { %v718_v38 = vmul.f32 0.2, %v646_v32  ;;  %v638_v39 = vadd.f32 %v1320_v58, %v1311_v46  ;;  %vm702_vm0 = vcmp.ge.f32.partialorder %v646_v32, 0.0  ;;  %v749_v46 = vld [vmem:[%s1364_s1] sm:$0xff] }
 0x281   :  { %v1313_v47 = vpop.f32.mrf.mxu0 }
 0x282   :  { %v649_v29 = vadd.f32 %v1313_v47, %v1320_v58  ;;  %v716_v43 = vmul.f32 0.2, %v638_v39  ;;  %v734_v44 = vsel %vm702_vm0, %v646_v32, %v718_v38  ;;  %vm700_vm2 = vcmp.ge.f32.partialorder %v638_v39, 0.0 }
 0x283   :  { %v1315_v48 = vpop.f32.mrf.mxu0 }
 0x284   :  { %v719_v24 = vmul.f32 0.2, %v649_v29  ;;  %v641_v35 = vadd.f32 %v1320_v58, %v1315_v48  ;;  %vm703_vm15 = vcmp.ge.f32.partialorder %v649_v29, 0.0  ;;  %v732_v47 = vsel %vm700_vm2, %v638_v39, %v716_v43 }
 0x285   :  { %v1008_v49 = vpop.f32.mrf.mxu0 }
 0x286   :  { %v662_v19 = vadd.f32 %v1008_v49, %v1320_v58  ;;  %v717_v41 = vmul.f32 0.2, %v641_v35  ;;  %v735_v42 = vsel %vm703_vm15, %v649_v29, %v719_v24  ;;  %vm701_vm1 = vcmp.ge.f32.partialorder %v641_v35, 0.0 }
 0x287   :  { %v653_v50 = vpop.f32.mrf.mxu0 }
 0x288   :  { %v722_v26 = vmul.f32 0.2, %v662_v19  ;;  %v654_v27 = vadd.f32 %v1320_v58, %v653_v50  ;;  %vm706_vm12 = vcmp.ge.f32.partialorder %v662_v19, 0.0  ;;  %v733_v36 = vsel %vm701_vm1, %v641_v35, %v717_v41 }
 0x289   :  { %v1009_v51 = vpop.f32.mrf.mxu0 }
 0x28a   :  { %v665_v16 = vadd.f32 %v1009_v51, %v1320_v58  ;;  %v720_v33 = vmul.f32 0.2, %v654_v27  ;;  %v738_v34 = vsel %vm706_vm12, %v662_v19, %v722_v26  ;;  %vm704_vm14 = vcmp.ge.f32.partialorder %v654_v27, 0.0 }
 0x28b   :  { %v656_v52 = vpop.f32.mrf.mxu0 }
 0x28c   :  { %v723_v22 = vmul.f32 0.2, %v665_v16  ;;  %v657_v23 = vadd.f32 %v1320_v58, %v656_v52  ;;  %vm707_vm11 = vcmp.ge.f32.partialorder %v665_v16, 0.0  ;;  %v736_v40 = vsel %vm704_vm14, %v654_v27, %v720_v33 }
 0x28d   :  { %v1012_v53 = vpop.f32.mrf.mxu0 }
 0x28e   :  { %v678_v7 = vadd.f32 %v1012_v53, %v1320_v58  ;;  %v721_v30 = vmul.f32 0.2, %v657_v23  ;;  %v739_v31 = vsel %vm707_vm11, %v665_v16, %v723_v22  ;;  %vm705_vm13 = vcmp.ge.f32.partialorder %v657_v23, 0.0 }
 0x28f   :  { %v669_v54 = vpop.f32.mrf.mxu0 }
 0x290   :  { %v726_v13 = vmul.f32 0.2, %v678_v7  ;;  %v670_v14 = vadd.f32 %v1320_v58, %v669_v54  ;;  %vm710_vm8 = vcmp.ge.f32.partialorder %v678_v7, 0.0  ;;  %v737_v37 = vsel %vm705_vm13, %v657_v23, %v721_v30 }
 0x291   :  { %v1013_v55 = vpop.f32.mrf.mxu0 }
 0x292   :  { %v681_v4 = vadd.f32 %v1013_v55, %v1320_v58  ;;  %v724_v20 = vmul.f32 0.2, %v670_v14  ;;  %v742_v21 = vsel %vm710_vm8, %v678_v7, %v726_v13  ;;  %vm708_vm10 = vcmp.ge.f32.partialorder %v670_v14, 0.0 }
 0x293   :  { %v672_v56 = vpop.f32.mrf.mxu0 }
 0x294   :  { %v727_v10 = vmul.f32 0.2, %v681_v4  ;;  %v673_v11 = vadd.f32 %v1320_v58, %v672_v56  ;;  %vm711_vm7 = vcmp.ge.f32.partialorder %v681_v4, 0.0  ;;  %v740_v28 = vsel %vm708_vm10, %v670_v14, %v724_v20 }
 0x295   :  { %v1016_v57 = vpop.f32.mrf.mxu0 }
 0x296   :  { %v694_v59 = vadd.f32 %v1016_v57, %v1320_v58  ;;  %v725_v17 = vmul.f32 0.2, %v673_v11  ;;  %v743_v18 = vsel %vm711_vm7, %v681_v4, %v727_v10  ;;  %vm709_vm9 = vcmp.ge.f32.partialorder %v673_v11, 0.0 }
 0x297   :  { %v685_v60 = vpop.f32.mrf.mxu0 }
 0x298   :  { %v730_v63 = vmul.f32 0.2, %v694_v59  ;;  %v686_v1 = vadd.f32 %v1320_v58, %v685_v60  ;;  %vm714_vm4 = vcmp.ge.f32.partialorder %v694_v59, 0.0  ;;  %v741_v25 = vsel %vm709_vm9, %v673_v11, %v725_v17 }
 0x299   :  { %v1017_v61 = vpop.f32.mrf.mxu0 }
 0x29a   :  { %v697_v62 = vadd.f32 %v1017_v61, %v1320_v58  ;;  %v728_v8 = vmul.f32 0.2, %v686_v1  ;;  %v746_v9 = vsel %vm714_vm4, %v694_v59, %v730_v63  ;;  %vm712_vm6 = vcmp.ge.f32.partialorder %v686_v1, 0.0 }
 0x29b   :  { %v688_v0 = vpop.f32.mrf.mxu0 }
 0x29c   :  { %vm715_vm3 = vcmp.ge.f32.partialorder %v697_v62, 0.0  ;;  %v731_v2 = vmul.f32 0.2, %v697_v62  ;;  %v689_v3 = vadd.f32 %v1320_v58, %v688_v0  ;;  %v744_v15 = vsel %vm712_vm6, %v686_v1, %v728_v8 }
 0x29e   :  { %v729_v5 = vmul.f32 0.2, %v689_v3  ;;  %v747_v6 = vsel %vm715_vm3, %v697_v62, %v731_v2  ;;  %vm713_vm5 = vcmp.ge.f32.partialorder %v689_v3, 0.0 }
 0x29f   :  { %1019 = vmatpush3.msra.mxu1 %v747_v6 }
 0x2a0   :  { %1020 = vmatprep.subr.mxu1 %v1155_v45  ;;  %v745_v12 = vsel %vm713_vm5, %v689_v3, %v729_v5 }
 0x2a1   :  { %1021 = vmatpush3.msra.mxu1 %v746_v9 }
 0x2a2   :  { %1022 = vmatprep.subr.mxu1 %v1155_v45 }
 0x2a3   :  { %1023 = vmatpush3.msra.mxu1 %v745_v12 }
 0x2a4   :  { %1024 = vmatprep.subr.mxu1 %v1155_v45 }
 0x2a5   :  { %1025 = vmatpush3.msra.mxu1 %v744_v15 }
 0x2a6   :  { %1026 = vmatprep.subr.mxu1 %v1155_v45 }
 0x2a7   :  { %1027 = vmatpush3.msra.mxu1 %v743_v18 }
 0x2a8   :  { %1028 = vmatprep.subr.mxu1 %v1155_v45 }
 0x2a9   :  { %1029 = vmatpush3.msra.mxu1 %v742_v21 }
 0x2aa   :  { %1030 = vmatprep.subr.mxu1 %v1155_v45 }
 0x2ab   :  { %1031 = vmatpush3.msra.mxu1 %v741_v25 }
 0x2ac   :  { %1032 = vmatprep.subr.mxu1 %v1155_v45 }
 0x2ad   :  { %1033 = vmatpush3.msra.mxu1 %v740_v28 }
 0x2ae   :  { %1034 = vmatprep.subr.mxu1 %v1155_v45 }
 0x2af   :  { %1035 = vmatpush3.msra.mxu1 %v739_v31 }
 0x2b0   :  { %1036 = vmatprep.subr.mxu1 %v1155_v45 }
 0x2b1   :  { %1037 = vmatpush3.msra.mxu1 %v738_v34 }
 0x2b2   :  { %1038 = vmatprep.subr.mxu1 %v1155_v45 }
 0x2b3   :  { %1039 = vmatpush3.msra.mxu1 %v737_v37 }
 0x2b4   :  { %1040 = vmatprep.subr.mxu1 %v1155_v45 }
 0x2b5   :  { %1041 = vmatpush3.msra.mxu1 %v736_v40 }
 0x2b6   :  { %1042 = vmatprep.subr.mxu1 %v1155_v45 }
 0x2b7   :  { %1043 = vmatpush3.msra.mxu1 %v735_v42 }
 0x2b8   :  { %1044 = vmatprep.subr.mxu1 %v1155_v45 }
 0x2b9   :  { %1045 = vmatpush3.msra.mxu1 %v734_v44 }
 0x2ba   :  { %1046 = vmatprep.subr.mxu1 %v1155_v45 }
 0x2bb   :  { %1047 = vmatpush3.msra.mxu1 %v733_v36 }
 0x2bc   :  { %1048 = vmatprep.subr.mxu1 %v1155_v45 }
 0x2bd   :  { %1049 = vmatpush3.msra.mxu1 %v732_v47 }
 0x2be   :  { %1051 = vmatmul.mubr.f32.vlgmr.msra.gmra.mxu1 %v749_v46 }
 0x37e   :  { %v816_v48 = vpop.f32.mrf.mxu1 }
 0x37f   :  { %826 = vst [vmem:[#allocation8] sm:$0xff] %v816_v48 }
 0x380   :  { %v1052_v49 = vpop.f32.mrf.mxu1 }
 0x381   :  { %1136 = shalt.err (!%p1133_p0)
}
 0x382   :  { %836 = dma.vmem_to_hbm [thread:$0]  %s834_s27, 128, %s1371_s8, [#allocation5]  }
 0x383   :  { %1149 = dma.done.wait [#allocation5], 128  }
 0x384   :  { %1150 = vsyncadd [#allocation5], 4294967168 }
 0x385   :  { %840 = vsyncpa [#allocation4], 1 }
 0x386   :  { %841 = vsyncpa [#allocation7], 1 }
 0x387   :  { %842 = vsyncpa [#allocation5], 1 }

</bundles_post_ra>
